<compile_context>
chip_gen: v5e
topology: v5e:2x2
jax: 0.10.0
libtpu: 0.0.40
codegen_flags: <defaults>
</compile_context>

<pallas_src>
import functools

import jax
import jax.numpy as jnp
from jax.experimental import pallas as pl
from jax.experimental.pallas import tpu as pltpu

LANE = 128


def _round_up(n, m):
    return ((n + m - 1) // m) * m


def dense_nn_kernel(x_ref,
                    w1_ref, b1_ref,
                    w2_ref, b2_ref,
                    w3_ref, b3_ref,
                    w4_ref, b4_ref,
                    o_ref):
    # x arrives as f32 straight from HBM; cast to bf16 (MXU input dtype) here
    # instead of in the wrapper so there is no extra HBM convert pass.
    xb = x_ref[...].astype(jnp.bfloat16)

    # fc1 (+ folded BN1) -> relu.  bf16 MXU inputs, f32 accumulation.
    h = jnp.dot(xb, w1_ref[...], preferred_element_type=jnp.float32) + b1_ref[...]
    h = jnp.maximum(h, 0.0)
    # TODO(synk): nn.Dropout(0.3) is identity in eval mode; training-mode RNG mask not reproduced.

    # fc2 (+ folded BN2) -> relu   (64 real features, zero-padded to 128 lanes)
    h = jnp.dot(h.astype(jnp.bfloat16), w2_ref[...],
                preferred_element_type=jnp.float32) + b2_ref[...]
    h = jnp.maximum(h, 0.0)

    # fc3 (+ folded BN3) -> relu   (32 real features, zero-padded to 128 lanes)
    h = jnp.dot(h.astype(jnp.bfloat16), w3_ref[...],
                preferred_element_type=jnp.float32) + b3_ref[...]
    h = jnp.maximum(h, 0.0)

    # fc4 (num_classes zero-padded to 128 lanes -> lane-dense, unmasked store)
    out = jnp.dot(h.astype(jnp.bfloat16), w4_ref[...],
                  preferred_element_type=jnp.float32) + b4_ref[...]
    o_ref[...] = out.astype(o_ref.dtype)     # bf16 writeback


def fold_and_pack(params, num_classes):
    """Fold eval-mode BatchNorm into the preceding Linear and zero-pad every
    hidden / output width to 128 lanes.

    (x @ W + b) * s + t  ==  x @ (W*s) + (b*s + t).  Folding/padding is done in
    f32; weights are then cast to bf16 (MXU input dtype), biases stay f32.
    Padded columns get zero weight and zero bias, so padded activations are
    exactly 0 and padded input rows of the next layer are also 0.
    """
    c_pad = _round_up(num_classes, LANE)
    packed = []
    for layer in (1, 2, 3):
        w = params[f"w{layer}"] * params[f"s{layer}"]
        b = params[f"b{layer}"] * params[f"s{layer}"] + params[f"t{layer}"]
        fan_in, fan_out = w.shape
        in_pad = fan_in if layer == 1 else LANE
        wp = jnp.zeros((in_pad, LANE), jnp.float32).at[:fan_in, :fan_out].set(w)
        bp = jnp.zeros((1, LANE), jnp.float32).at[:, :fan_out].set(b)
        packed.append(wp.astype(jnp.bfloat16))
        packed.append(bp)                                 # f32
    w4 = params["w4"]
    b4 = params["b4"]
    fan_in, fan_out = w4.shape
    w4p = jnp.zeros((LANE, c_pad), jnp.float32).at[:fan_in, :fan_out].set(w4)
    b4p = jnp.zeros((1, c_pad), jnp.float32).at[:, :fan_out].set(b4)
    packed.append(w4p.astype(jnp.bfloat16))
    packed.append(b4p)                                    # f32
    return tuple(packed)


def _choose_tb(batch, tile_b):
    """Batch tile: large enough to amortize per-grid-step overhead and hit the
    HBM roofline, >=2 grid steps when the batch allows (v7x megacore), and a
    multiple of 16 sublanes unless it equals the full batch."""
    tile_b = min(tile_b, 2048)   # cap: 2 x 8 MiB f32 x buffers fit v7x's 64 MiB VMEM
    if batch <= tile_b:
        if batch >= 32:
            half = _round_up(pl.cdiv(batch, 2), 16)
            if half < batch:
                return half      # 2 grid steps -> both v7x TensorCores get work
        return batch             # single full block (always a legal block shape)
    return max(16, (tile_b // 16) * 16)


@functools.partial(jax.jit, static_argnames=("num_classes", "tile_b"))
def dense_nn_forward(x_flat, params, *, num_classes, tile_b=1024):
    """x_flat: (B, input_size) float32.  Returns (B, num_classes) float32 logits."""
    B, D = x_flat.shape
    w1, b1, w2, b2, w3, b3, w4, b4 = fold_and_pack(params, num_classes)
    c_pad = w4.shape[1]

    tb = _choose_tb(B, tile_b)
    grid = pl.cdiv(B, tb)        # ragged last tile handled by Pallas (masked store)

    def const_spec(shape):
        # Constant block index across the grid -> weights/biases stay resident in VMEM.
        return pl.BlockSpec(shape, lambda i: (0,) * len(shape))

    in_specs = [
        pl.BlockSpec((tb, D), lambda i: (i, 0)),          # f32 x streams over the grid
        const_spec(w1.shape), const_spec(b1.shape),
        const_spec(w2.shape), const_spec(b2.shape),
        const_spec(w3.shape), const_spec(b3.shape),
        const_spec(w4.shape), const_spec(b4.shape),
    ]
    out_specs = pl.BlockSpec((tb, c_pad), lambda i: (i, 0))

    weight_bytes = sum(int(a.size) * a.dtype.itemsize
                       for a in (w1, b1, w2, b2, w3, b3, w4, b4))
    # FLOPs actually executed (padded widths); traffic: f32 x in, weights, bf16 out.
    flops = 2 * B * (D * LANE + LANE * LANE + LANE * LANE + LANE * c_pad)
    bytes_accessed = B * D * 4 + weight_bytes + B * c_pad * 2

    vmem_needed = 2 * (tb * D * 4 + tb * c_pad * 2) + 2 * weight_bytes
    vmem_limit = int(min(48 * 1024 * 1024,
                         max(32 * 1024 * 1024, 1.25 * vmem_needed)))

    out = pl.pallas_call(
        dense_nn_kernel,
        out_shape=jax.ShapeDtypeStruct((B, c_pad), jnp.bfloat16),
        grid=(grid,),
        in_specs=in_specs,
        out_specs=out_specs,
        compiler_params=pltpu.CompilerParams(
            dimension_semantics=("parallel",),
            vmem_limit_bytes=vmem_limit),
        cost_estimate=pl.CostEstimate(
            flops=int(flops), transcendentals=0,
            bytes_accessed=int(bytes_accessed)),
    )(x_flat, w1, b1, w2, b2, w3, b3, w4, b4)

    # The padded (B, 128) bf16 buffer can be consumed downstream as-is (e.g.
    # argmax); here we widen and strip the lane padding (tiny vs. x traffic).
    return out[:, :num_classes].astype(jnp.float32)


def init_params(key, input_size, num_classes):
    """PyTorch-style Linear init + eval-mode BatchNorm1d stats reduced to (s, t)."""
    dims = [input_size, 128, 64, 32, num_classes]
    params = {}
    keys = jax.random.split(key, 32)
    ki = 0
    for layer in range(4):
        fan_in, fan_out = dims[layer], dims[layer + 1]
        bound = 1.0 / jnp.sqrt(fan_in)
        w = jax.random.uniform(keys[ki], (fan_in, fan_out), jnp.float32, -bound, bound); ki += 1
        b = jax.random.uniform(keys[ki], (1, fan_out), jnp.float32, -bound, bound); ki += 1
        params[f"w{layer + 1}"] = w
        params[f"b{layer + 1}"] = b
    eps = 1e-5
    for bn, feat in zip((1, 2, 3), (128, 64, 32)):
        gamma = 1.0 + 0.1 * jax.random.normal(keys[ki], (1, feat), jnp.float32); ki += 1
        beta = 0.1 * jax.random.normal(keys[ki], (1, feat), jnp.float32); ki += 1
        rmean = 0.05 * jax.random.normal(keys[ki], (1, feat), jnp.float32); ki += 1
        rvar = 1.0 + 0.1 * jax.random.uniform(keys[ki], (1, feat), jnp.float32); ki += 1
        scale = gamma / jnp.sqrt(rvar + eps)
        shift = beta - rmean * scale
        params[f"s{bn}"] = scale
        params[f"t{bn}"] = shift
    return params


def reference_forward_bf16(x_flat, params, num_classes):
    """Pure-JAX reference following the kernel's exact dtype/padding path."""
    w1, b1, w2, b2, w3, b3, w4, b4 = fold_and_pack(params, num_classes)
    xb = x_flat.astype(jnp.bfloat16)
    h = jnp.maximum(jnp.dot(xb, w1, preferred_element_type=jnp.float32) + b1, 0.0)
    h = jnp.maximum(jnp.dot(h.astype(jnp.bfloat16), w2,
                            preferred_element_type=jnp.float32) + b2, 0.0)
    h = jnp.maximum(jnp.dot(h.astype(jnp.bfloat16), w3,
                            preferred_element_type=jnp.float32) + b3, 0.0)
    out = (jnp.dot(h.astype(jnp.bfloat16), w4,
                   preferred_element_type=jnp.float32) + b4).astype(jnp.bfloat16)
    return out[:, :num_classes].astype(jnp.float32)


def reference_forward_f32(x_flat, p):
    """Full-precision reference of the original (unfolded) eval-mode math."""
    h = jnp.maximum((x_flat @ p["w1"] + p["b1"]) * p["s1"] + p["t1"], 0.0)
    h = jnp.maximum((h @ p["w2"] + p["b2"]) * p["s2"] + p["t2"], 0.0)
    h = jnp.maximum((h @ p["w3"] + p["b3"]) * p["s3"] + p["t3"], 0.0)
    return h @ p["w4"] + p["b4"]


if __name__ == "__main__":
    key = jax.random.PRNGKey(0)
    k_x, k_p = jax.random.split(key)

    B, C_in, H, W = 8, 4, 16, 16          # NCHW input, like PyTorch
    num_classes = 10
    input_size = C_in * H * W             # 1024

    x = jax.random.normal(k_x, (B, C_in, H, W), jnp.float32)
    x_flat = x.reshape(B, -1)              # nn.Flatten (row-major)

    params = init_params(k_p, input_size, num_classes)

    out = dense_nn_forward(x_flat, params, num_classes=num_classes)
    out = jax.block_until_ready(out)
    assert out.shape == (B, num_classes)
    assert out.dtype == jnp.float32

    ref_bf16 = reference_forward_bf16(x_flat, params, num_classes)
    ref_f32 = reference_forward_f32(x_flat, params)

    assert jnp.allclose(out, ref_bf16, atol=3e-2, rtol=3e-2), \
        float(jnp.max(jnp.abs(out - ref_bf16)))
    assert jnp.allclose(out, ref_f32, atol=2e-1, rtol=2e-1), \
        float(jnp.max(jnp.abs(out - ref_f32)))

    print("KERNEL_OK")
</pallas_src>

<mosaic_0001>
module attributes {stable_mosaic.version = 11 : i64} {
  func.func @dense_nn_kernel(%arg0: i32, %arg1: memref<8x1024xf32, #tpu.memory_space<vmem>>, %arg2: memref<1024x128xbf16, #tpu.memory_space<vmem>>, %arg3: memref<1x128xf32, #tpu.memory_space<vmem>>, %arg4: memref<128x128xbf16, #tpu.memory_space<vmem>>, %arg5: memref<1x128xf32, #tpu.memory_space<vmem>>, %arg6: memref<128x128xbf16, #tpu.memory_space<vmem>>, %arg7: memref<1x128xf32, #tpu.memory_space<vmem>>, %arg8: memref<128x128xbf16, #tpu.memory_space<vmem>>, %arg9: memref<1x128xf32, #tpu.memory_space<vmem>>, %arg10: memref<8x128xbf16, #tpu.memory_space<vmem>>) attributes {dimension_semantics = [#tpu.dimension_semantics<parallel>], iteration_bounds = array<i64: 1>, scalar_prefetch = 0 : i64, scratch_operands = 0 : i64, tpu.core_type = #tpu.core_type<tc>, window_params = [{transform_indices = @transform_0, window_bounds = array<i64: 8, 1024>}, {pipeline_mode = #tpu.pipeline_mode<synchronous>, transform_indices = @transform_1, window_bounds = array<i64: 1024, 128>}, {pipeline_mode = #tpu.pipeline_mode<synchronous>, transform_indices = @transform_2, window_bounds = array<i64: 1, 128>}, {pipeline_mode = #tpu.pipeline_mode<synchronous>, transform_indices = @transform_3, window_bounds = array<i64: 128, 128>}, {pipeline_mode = #tpu.pipeline_mode<synchronous>, transform_indices = @transform_4, window_bounds = array<i64: 1, 128>}, {pipeline_mode = #tpu.pipeline_mode<synchronous>, transform_indices = @transform_5, window_bounds = array<i64: 128, 128>}, {pipeline_mode = #tpu.pipeline_mode<synchronous>, transform_indices = @transform_6, window_bounds = array<i64: 1, 128>}, {pipeline_mode = #tpu.pipeline_mode<synchronous>, transform_indices = @transform_7, window_bounds = array<i64: 128, 128>}, {pipeline_mode = #tpu.pipeline_mode<synchronous>, transform_indices = @transform_8, window_bounds = array<i64: 1, 128>}, {transform_indices = @transform_9, window_bounds = array<i64: 8, 128>}]} {
    %c0 = arith.constant 0 : index
    %c0_0 = arith.constant 0 : index
    %0 = vector.load %arg1[%c0, %c0_0] : memref<8x1024xf32, #tpu.memory_space<vmem>>, vector<8x1024xf32>
    %1 = arith.truncf %0 : vector<8x1024xf32> to vector<8x1024xbf16>
    %c0_1 = arith.constant 0 : index
    %c0_2 = arith.constant 0 : index
    %2 = vector.load %arg2[%c0_1, %c0_2] : memref<1024x128xbf16, #tpu.memory_space<vmem>>, vector<1024x128xbf16>
    %cst = arith.constant dense<0.000000e+00> : vector<8x128xf32>
    %3 = tpu.matmul %1, %2, %cst {dimension_numbers = #tpu.dot_dimension_numbers<[1], [0], [0], [1], [0, 0, 1, 1], [], []>} : vector<8x1024xbf16>, vector<1024x128xbf16>, vector<8x128xf32> -> vector<8x128xf32>
    %c0_3 = arith.constant 0 : index
    %c0_4 = arith.constant 0 : index
    %4 = vector.load %arg3[%c0_3, %c0_4] : memref<1x128xf32, #tpu.memory_space<vmem>>, vector<1x128xf32>
    %5 = vector.broadcast %4 : vector<1x128xf32> to vector<8x128xf32>
    %6 = arith.addf %3, %5 : vector<8x128xf32>
    %cst_5 = arith.constant 0.000000e+00 : f32
    %7 = vector.broadcast %cst_5 : f32 to vector<8x128xf32>
    %8 = arith.maximumf %6, %7 : vector<8x128xf32>
    %9 = arith.truncf %8 : vector<8x128xf32> to vector<8x128xbf16>
    %c0_6 = arith.constant 0 : index
    %c0_7 = arith.constant 0 : index
    %10 = vector.load %arg4[%c0_6, %c0_7] : memref<128x128xbf16, #tpu.memory_space<vmem>>, vector<128x128xbf16>
    %cst_8 = arith.constant dense<0.000000e+00> : vector<8x128xf32>
    %11 = tpu.matmul %9, %10, %cst_8 {dimension_numbers = #tpu.dot_dimension_numbers<[1], [0], [0], [1], [0, 0, 1, 1], [], []>} : vector<8x128xbf16>, vector<128x128xbf16>, vector<8x128xf32> -> vector<8x128xf32>
    %c0_9 = arith.constant 0 : index
    %c0_10 = arith.constant 0 : index
    %12 = vector.load %arg5[%c0_9, %c0_10] : memref<1x128xf32, #tpu.memory_space<vmem>>, vector<1x128xf32>
    %13 = vector.broadcast %12 : vector<1x128xf32> to vector<8x128xf32>
    %14 = arith.addf %11, %13 : vector<8x128xf32>
    %cst_11 = arith.constant 0.000000e+00 : f32
    %15 = vector.broadcast %cst_11 : f32 to vector<8x128xf32>
    %16 = arith.maximumf %14, %15 : vector<8x128xf32>
    %17 = arith.truncf %16 : vector<8x128xf32> to vector<8x128xbf16>
    %c0_12 = arith.constant 0 : index
    %c0_13 = arith.constant 0 : index
    %18 = vector.load %arg6[%c0_12, %c0_13] : memref<128x128xbf16, #tpu.memory_space<vmem>>, vector<128x128xbf16>
    %cst_14 = arith.constant dense<0.000000e+00> : vector<8x128xf32>
    %19 = tpu.matmul %17, %18, %cst_14 {dimension_numbers = #tpu.dot_dimension_numbers<[1], [0], [0], [1], [0, 0, 1, 1], [], []>} : vector<8x128xbf16>, vector<128x128xbf16>, vector<8x128xf32> -> vector<8x128xf32>
    %c0_15 = arith.constant 0 : index
    %c0_16 = arith.constant 0 : index
    %20 = vector.load %arg7[%c0_15, %c0_16] : memref<1x128xf32, #tpu.memory_space<vmem>>, vector<1x128xf32>
    %21 = vector.broadcast %20 : vector<1x128xf32> to vector<8x128xf32>
    %22 = arith.addf %19, %21 : vector<8x128xf32>
    %cst_17 = arith.constant 0.000000e+00 : f32
    %23 = vector.broadcast %cst_17 : f32 to vector<8x128xf32>
    %24 = arith.maximumf %22, %23 : vector<8x128xf32>
    %25 = arith.truncf %24 : vector<8x128xf32> to vector<8x128xbf16>
    %c0_18 = arith.constant 0 : index
    %c0_19 = arith.constant 0 : index
    %26 = vector.load %arg8[%c0_18, %c0_19] : memref<128x128xbf16, #tpu.memory_space<vmem>>, vector<128x128xbf16>
    %cst_20 = arith.constant dense<0.000000e+00> : vector<8x128xf32>
    %27 = tpu.matmul %25, %26, %cst_20 {dimension_numbers = #tpu.dot_dimension_numbers<[1], [0], [0], [1], [0, 0, 1, 1], [], []>} : vector<8x128xbf16>, vector<128x128xbf16>, vector<8x128xf32> -> vector<8x128xf32>
    %c0_21 = arith.constant 0 : index
    %c0_22 = arith.constant 0 : index
    %28 = vector.load %arg9[%c0_21, %c0_22] : memref<1x128xf32, #tpu.memory_space<vmem>>, vector<1x128xf32>
    %29 = vector.broadcast %28 : vector<1x128xf32> to vector<8x128xf32>
    %30 = arith.addf %27, %29 : vector<8x128xf32>
    %31 = arith.truncf %30 : vector<8x128xf32> to vector<8x128xbf16>
    %c0_23 = arith.constant 0 : index
    %c0_24 = arith.constant 0 : index
    %32 = vector.load %arg10[%c0_23, %c0_24] : memref<8x128xbf16, #tpu.memory_space<vmem>>, vector<8x128xbf16>
    tpu.vector_store %arg10[%c0_23, %c0_24], %31 {strides = array<i32>} : memref<8x128xbf16, #tpu.memory_space<vmem>>, vector<8x128xbf16>,
    return
  }
  func.func @transform_0(%arg0: i32) -> (i32, i32) {
    %c0_i32 = arith.constant 0 : i32
    %c0_i32_0 = arith.constant 0 : i32
    return %arg0, %c0_i32 : i32, i32
  }
  func.func @transform_1(%arg0: i32) -> (i32, i32) {
    %c0_i32 = arith.constant 0 : i32
    %c0_i32_0 = arith.constant 0 : i32
    %c0_i32_1 = arith.constant 0 : i32
    return %c0_i32, %c0_i32_0 : i32, i32
  }
  func.func @transform_2(%arg0: i32) -> (i32, i32) {
    %c0_i32 = arith.constant 0 : i32
    %c0_i32_0 = arith.constant 0 : i32
    %c0_i32_1 = arith.constant 0 : i32
    return %c0_i32, %c0_i32_0 : i32, i32
  }
  func.func @transform_3(%arg0: i32) -> (i32, i32) {
    %c0_i32 = arith.constant 0 : i32
    %c0_i32_0 = arith.constant 0 : i32
    %c0_i32_1 = arith.constant 0 : i32
    return %c0_i32, %c0_i32_0 : i32, i32
  }
  func.func @transform_4(%arg0: i32) -> (i32, i32) {
    %c0_i32 = arith.constant 0 : i32
    %c0_i32_0 = arith.constant 0 : i32
    %c0_i32_1 = arith.constant 0 : i32
    return %c0_i32, %c0_i32_0 : i32, i32
  }
  func.func @transform_5(%arg0: i32) -> (i32, i32) {
    %c0_i32 = arith.constant 0 : i32
    %c0_i32_0 = arith.constant 0 : i32
    %c0_i32_1 = arith.constant 0 : i32
    return %c0_i32, %c0_i32_0 : i32, i32
  }
  func.func @transform_6(%arg0: i32) -> (i32, i32) {
    %c0_i32 = arith.constant 0 : i32
    %c0_i32_0 = arith.constant 0 : i32
    %c0_i32_1 = arith.constant 0 : i32
    return %c0_i32, %c0_i32_0 : i32, i32
  }
  func.func @transform_7(%arg0: i32) -> (i32, i32) {
    %c0_i32 = arith.constant 0 : i32
    %c0_i32_0 = arith.constant 0 : i32
    %c0_i32_1 = arith.constant 0 : i32
    return %c0_i32, %c0_i32_0 : i32, i32
  }
  func.func @transform_8(%arg0: i32) -> (i32, i32) {
    %c0_i32 = arith.constant 0 : i32
    %c0_i32_0 = arith.constant 0 : i32
    %c0_i32_1 = arith.constant 0 : i32
    return %c0_i32, %c0_i32_0 : i32, i32
  }
  func.func @transform_9(%arg0: i32) -> (i32, i32) {
    %c0_i32 = arith.constant 0 : i32
    %c0_i32_0 = arith.constant 0 : i32
    return %arg0, %c0_i32 : i32, i32
  }
}

</mosaic_0001>

<bundles_post_ra>
// kernel: dense_nn_forward.1
= control target key start
LH: loop header
LB: loop body
LE: loop exit
PB: predicated region body
PF: predicated region fallthrough
CT: control target
= control target key end

     0   :  { %s1720_s1 = inlined_call_operand.vmem [shape: bf16[1024,128], index: 1, kind: input, shape index: {}]   ;;  %s1721_s2 = inlined_call_operand.vmem [shape: f32[1,128], index: 2, kind: input, shape index: {}]   ;;  %s1722_s0 = inlined_call_operand.vmem [shape: f32[8,1024], index: 0, kind: input, shape index: {}]   ;;  %s1723_s4 = inlined_call_operand.vmem [shape: f32[1,128], index: 4, kind: input, shape index: {}]   ;;  %s1724_s3 = inlined_call_operand.vmem [shape: bf16[128,128], index: 3, kind: input, shape index: {}]   ;;  %s1725_s5 = inlined_call_operand.vmem [shape: bf16[128,128], index: 5, kind: input, shape index: {}]   ;;  %s1726_s6 = inlined_call_operand.vmem [shape: f32[1,128], index: 6, kind: input, shape index: {}]   ;;  %s1727_s7 = inlined_call_operand.vmem [shape: bf16[128,128], index: 7, kind: input, shape index: {}]   ;;  %s1728_s8 = inlined_call_operand.vmem [shape: f32[1,128], index: 8, kind: input, shape index: {}]   ;;  %s1729_s9 = inlined_call_operand.vmem [shape: bf16[8,128], index: 9, kind: output, shape index: {}]  }
   0x1   :  { %v1282_v0 = vld [vmem:[%s1720_s1 + $0x38] sm:$0xff]  ;;  %v1281_v4 = vld [vmem:[%s1720_s1 + $0x30] sm:$0xff]  ;;  %v1280_v8 = vld [vmem:[%s1720_s1 + $0x28] sm:$0xff] }
   0x2   :  { %v1290_v1 = vld [vmem:[%s1720_s1 + $0x78] sm:$0xff]  ;;  %564 = vmatpush.bf16.msra.mxu0 %v1282_v0  ;;  %v1289_v5 = vld [vmem:[%s1720_s1 + $0x70] sm:$0xff]  ;;  %v1288_v9 = vld [vmem:[%s1720_s1 + $0x68] sm:$0xff] }
   0x3   :  { %v1298_v2 = vld [vmem:[%s1720_s1 + $0xb8] sm:$0xff]  ;;  %577 = vmatpush.bf16.msra.mxu1 %v1290_v1  ;;  %v1297_v6 = vld [vmem:[%s1720_s1 + $0xb0] sm:$0xff]  ;;  %v1296_v10 = vld [vmem:[%s1720_s1 + $0xa8] sm:$0xff] }
   0x4   :  { %v1306_v3 = vld [vmem:[%s1720_s1 + $0xf8] sm:$0xff]  ;;  %590 = vmatpush.bf16.msra.mxu2 %v1298_v2  ;;  %v1305_v7 = vld [vmem:[%s1720_s1 + $0xf0] sm:$0xff]  ;;  %v1304_v11 = vld [vmem:[%s1720_s1 + $0xe8] sm:$0xff] }
   0x5   :  { %603 = vmatpush.bf16.msra.mxu3 %v1306_v3  ;;  %v1279_v12 = vld [vmem:[%s1720_s1 + $0x20] sm:$0xff]  ;;  %v1278_v16 = vld [vmem:[%s1720_s1 + $0x18] sm:$0xff]  ;;  %v1277_v20 = vld [vmem:[%s1720_s1 + $0x10] sm:$0xff] }
   0x6   :  { %565 = vmatpush.bf16.msra.mxu0 %v1281_v4  ;;  %v1287_v13 = vld [vmem:[%s1720_s1 + $0x60] sm:$0xff]  ;;  %v1286_v17 = vld [vmem:[%s1720_s1 + $0x58] sm:$0xff]  ;;  %v1285_v21 = vld [vmem:[%s1720_s1 + $0x50] sm:$0xff] }
   0x7   :  { %578 = vmatpush.bf16.msra.mxu1 %v1289_v5  ;;  %v1295_v14 = vld [vmem:[%s1720_s1 + $0xa0] sm:$0xff]  ;;  %v1294_v18 = vld [vmem:[%s1720_s1 + $0x98] sm:$0xff]  ;;  %v1293_v22 = vld [vmem:[%s1720_s1 + $0x90] sm:$0xff] }
   0x8   :  { %591 = vmatpush.bf16.msra.mxu2 %v1297_v6  ;;  %v1303_v15 = vld [vmem:[%s1720_s1 + $0xe0] sm:$0xff]  ;;  %v1302_v19 = vld [vmem:[%s1720_s1 + $0xd8] sm:$0xff]  ;;  %v1301_v23 = vld [vmem:[%s1720_s1 + $0xd0] sm:$0xff] }
   0x9   :  { %604 = vmatpush.bf16.msra.mxu3 %v1305_v7  ;;  %v1276_v24 = vld [vmem:[%s1720_s1 + $0x8] sm:$0xff]  ;;  %v1275_v28 = vld [vmem:[%s1720_s1] sm:$0xff]  ;;  %v1314_v32 = vld [vmem:[%s1720_s1 + $0x138] sm:$0xff] }
   0xa   :  { %566 = vmatpush.bf16.msra.mxu0 %v1280_v8  ;;  %v1284_v25 = vld [vmem:[%s1720_s1 + $0x48] sm:$0xff]  ;;  %v1283_v29 = vld [vmem:[%s1720_s1 + $0x40] sm:$0xff]  ;;  %v34_v33 = vld [vmem:[%s1722_s0 + $0x10] sm:$0xff] }
   0xb   :  { %579 = vmatpush.bf16.msra.mxu1 %v1288_v9  ;;  %v1292_v26 = vld [vmem:[%s1720_s1 + $0x88] sm:$0xff]  ;;  %v1291_v30 = vld [vmem:[%s1720_s1 + $0x80] sm:$0xff]  ;;  %v1322_v35 = vld [vmem:[%s1720_s1 + $0x178] sm:$0xff]  ;;  %v42_v40 = vpack.c.bf16 %v34_v33, %v34_v33 }
   0xc   :  { %592 = vmatpush.bf16.msra.mxu2 %v1296_v10  ;;  %v1300_v27 = vld [vmem:[%s1720_s1 + $0xc8] sm:$0xff]  ;;  %v1299_v31 = vld [vmem:[%s1720_s1 + $0xc0] sm:$0xff]  ;;  %v35_v36 = vld [vmem:[%s1722_s0 + $0x18] sm:$0xff] }
   0xd   :  { %605 = vmatpush.bf16.msra.mxu3 %v1304_v11  ;;  %v32_v34 = vld [vmem:[%s1722_s0] sm:$0xff]  ;;  %v33_v37 = vld [vmem:[%s1722_s0 + $0x8] sm:$0xff]  ;;  %v1330_v38 = vld [vmem:[%s1720_s1 + $0x1b8] sm:$0xff]  ;;  %v43_v42 = vpack.c.bf16 %v35_v36, %v35_v36 }
   0xe   :  { %567 = vmatpush.bf16.msra.mxu0 %v1279_v12  ;;  %v1338_v39 = vld [vmem:[%s1720_s1 + $0x1f8] sm:$0xff]  ;;  %v40_v41 = vpack.c.bf16 %v32_v34, %v32_v34  ;;  %v41_v43 = vpack.c.bf16 %v33_v37, %v33_v37  ;;  %v1313_v44 = vld [vmem:[%s1720_s1 + $0x130] sm:$0xff]  ;;  %v1312_v48 = vld [vmem:[%s1720_s1 + $0x128] sm:$0xff] }
   0xf   :  { %580 = vmatpush.bf16.msra.mxu1 %v1287_v13  ;;  %v1321_v45 = vld [vmem:[%s1720_s1 + $0x170] sm:$0xff]  ;;  %v1320_v49 = vld [vmem:[%s1720_s1 + $0x168] sm:$0xff]  ;;  %v1311_v52 = vld [vmem:[%s1720_s1 + $0x120] sm:$0xff] }
  0x10   :  { %593 = vmatpush.bf16.msra.mxu2 %v1295_v14  ;;  %v1329_v46 = vld [vmem:[%s1720_s1 + $0x1b0] sm:$0xff]  ;;  %v1328_v50 = vld [vmem:[%s1720_s1 + $0x1a8] sm:$0xff]  ;;  %v1319_v53 = vld [vmem:[%s1720_s1 + $0x160] sm:$0xff] }
  0x11   :  { %606 = vmatpush.bf16.msra.mxu3 %v1303_v15  ;;  %v1337_v47 = vld [vmem:[%s1720_s1 + $0x1f0] sm:$0xff]  ;;  %v1336_v51 = vld [vmem:[%s1720_s1 + $0x1e8] sm:$0xff]  ;;  %v1327_v54 = vld [vmem:[%s1720_s1 + $0x1a0] sm:$0xff] }
  0x12   :  { %568 = vmatpush.bf16.msra.mxu0 %v1278_v16  ;;  %v1335_v55 = vld [vmem:[%s1720_s1 + $0x1e0] sm:$0xff]  ;;  %v1310_v56 = vld [vmem:[%s1720_s1 + $0x118] sm:$0xff]  ;;  %v1309_v60 = vld [vmem:[%s1720_s1 + $0x110] sm:$0xff] }
  0x13   :  { %581 = vmatpush.bf16.msra.mxu1 %v1286_v17  ;;  %v1318_v57 = vld [vmem:[%s1720_s1 + $0x158] sm:$0xff]  ;;  %v1317_v61 = vld [vmem:[%s1720_s1 + $0x150] sm:$0xff]  ;;  %v1308_v0 = vld [vmem:[%s1720_s1 + $0x108] sm:$0xff] }
  0x14   :  { %594 = vmatpush.bf16.msra.mxu2 %v1294_v18  ;;  %v1326_v58 = vld [vmem:[%s1720_s1 + $0x198] sm:$0xff]  ;;  %v1325_v62 = vld [vmem:[%s1720_s1 + $0x190] sm:$0xff]  ;;  %v1316_v1 = vld [vmem:[%s1720_s1 + $0x148] sm:$0xff] }
  0x15   :  { %607 = vmatpush.bf16.msra.mxu3 %v1302_v19  ;;  %v1334_v59 = vld [vmem:[%s1720_s1 + $0x1d8] sm:$0xff]  ;;  %v1333_v63 = vld [vmem:[%s1720_s1 + $0x1d0] sm:$0xff]  ;;  %v1324_v2 = vld [vmem:[%s1720_s1 + $0x188] sm:$0xff] }
  0x16   :  { %569 = vmatpush.bf16.msra.mxu0 %v1277_v20  ;;  %v1332_v3 = vld [vmem:[%s1720_s1 + $0x1c8] sm:$0xff]  ;;  %v1307_v4 = vld [vmem:[%s1720_s1 + $0x100] sm:$0xff]  ;;  %v38_v10 = vld [vmem:[%s1722_s0 + $0x30] sm:$0xff] }
  0x17   :  { %582 = vmatpush.bf16.msra.mxu1 %v1285_v21  ;;  %v1315_v5 = vld [vmem:[%s1720_s1 + $0x140] sm:$0xff]  ;;  %v37_v8 = vld [vmem:[%s1722_s0 + $0x28] sm:$0xff]  ;;  %v39_v11 = vld [vmem:[%s1722_s0 + $0x38] sm:$0xff]  ;;  %v46_v14 = vpack.c.bf16 %v38_v10, %v38_v10 }
  0x18   :  { %595 = vmatpush.bf16.msra.mxu2 %v1293_v22  ;;  %v1323_v6 = vld [vmem:[%s1720_s1 + $0x180] sm:$0xff]  ;;  %v45_v13 = vpack.c.bf16 %v37_v8, %v37_v8  ;;  %v47_v15 = vpack.c.bf16 %v39_v11, %v39_v11  ;;  %v1346_v16 = vld [vmem:[%s1724_s3 + $0x38] sm:$0xff]  ;;  %v1345_v17 = vld [vmem:[%s1724_s3 + $0x30] sm:$0xff] }
  0x19   :  { %608 = vmatpush.bf16.msra.mxu3 %v1301_v23  ;;  %v36_v7 = vld [vmem:[%s1722_s0 + $0x20] sm:$0xff]  ;;  %v1344_v18 = vld [vmem:[%s1724_s3 + $0x28] sm:$0xff]  ;;  %v1342_v20 = vld [vmem:[%s1724_s3 + $0x18] sm:$0xff] }
  0x1a   :  { %570 = vmatpush.bf16.msra.mxu0 %v1276_v24  ;;  %v1331_v9 = vld [vmem:[%s1720_s1 + $0x1c0] sm:$0xff]  ;;  %v44_v12 = vpack.c.bf16 %v36_v7, %v36_v7  ;;  %v1341_v22 = vld [vmem:[%s1724_s3 + $0x10] sm:$0xff]  ;;  %v1340_v24 = vld [vmem:[%s1724_s3 + $0x8] sm:$0xff] }
  0x1b   :  { %583 = vmatpush.bf16.msra.mxu1 %v1284_v25  ;;  %v1343_v19 = vld [vmem:[%s1724_s3 + $0x20] sm:$0xff]  ;;  %v1353_v34 = vld [vmem:[%s1725_s5 + $0x30] sm:$0xff]  ;;  %v1352_v36 = vld [vmem:[%s1725_s5 + $0x28] sm:$0xff] }
  0x1c   :  { %596 = vmatpush.bf16.msra.mxu2 %v1292_v26  ;;  %v1356_v7 = vld [vmem:[%s1727_s7 + $0x8] sm:$0xff]  ;;  %v1355_v8 = vld [vmem:[%s1727_s7] sm:$0xff] }
  0x1d   :  { %609 = vmatpush.bf16.msra.mxu3 %v1300_v27 }
  0x1e   :  { %571 = vmatpush.bf16.msra.mxu0 %v1275_v28  ;;  %v1339_v28 = vld [vmem:[%s1724_s3] sm:$0xff] }
  0x1f   :  { %584 = vmatpush.bf16.msra.mxu1 %v1283_v29 }
  0x20   :  { %597 = vmatpush.bf16.msra.mxu2 %v1291_v30  ;;  %v1363_v30 = vld [vmem:[%s1721_s2] ss:$0 sm:$0xff] }
  0x21   :  { %610 = vmatpush.bf16.msra.mxu3 %v1299_v31  ;;  %572 = vmatmul.bf16.vlgmr.msra.gmra.mxu0 %v40_v41  ;;  %v1354_v31 = vld [vmem:[%s1725_s5 + $0x38] sm:$0xff] }
  0x22   :  { %616 = vmatpush.bf16.msrb.mxu0 %v1314_v32  ;;  %585 = vmatmul.bf16.vlgmr.msra.gmra.mxu1 %v41_v43 }
  0x23   :  { %629 = vmatpush.bf16.msrb.mxu1 %v1322_v35  ;;  %598 = vmatmul.bf16.vlgmr.msra.gmra.mxu2 %v42_v40  ;;  %v1350_v40 = vld [vmem:[%s1725_s5 + $0x18] sm:$0xff] }
  0x24   :  { %642 = vmatpush.bf16.msrb.mxu2 %v1330_v38  ;;  %611 = vmatmul.bf16.vlgmr.msra.gmra.mxu3 %v43_v42  ;;  %v1351_v38 = vld [vmem:[%s1725_s5 + $0x20] sm:$0xff] }
  0x25   :  { %655 = vmatpush.bf16.msrb.mxu3 %v1338_v39 }
  0x26   :  { %617 = vmatpush.bf16.msrb.mxu0 %v1313_v44 }
  0x27   :  { %630 = vmatpush.bf16.msrb.mxu1 %v1321_v45  ;;  %v1349_v45 = vld [vmem:[%s1725_s5 + $0x10] sm:$0xff] }
  0x28   :  { %643 = vmatpush.bf16.msrb.mxu2 %v1329_v46 }
  0x29   :  { %656 = vmatpush.bf16.msrb.mxu3 %v1337_v47 }
  0x2a   :  { %618 = vmatpush.bf16.msrb.mxu0 %v1312_v48 }
  0x2b   :  { %631 = vmatpush.bf16.msrb.mxu1 %v1320_v49 }
  0x2c   :  { %644 = vmatpush.bf16.msrb.mxu2 %v1328_v50 }
  0x2d   :  { %657 = vmatpush.bf16.msrb.mxu3 %v1336_v51 }
  0x2e   :  { %619 = vmatpush.bf16.msrb.mxu0 %v1311_v52 }
  0x2f   :  { %632 = vmatpush.bf16.msrb.mxu1 %v1319_v53 }
  0x30   :  { %645 = vmatpush.bf16.msrb.mxu2 %v1327_v54 }
  0x31   :  { %658 = vmatpush.bf16.msrb.mxu3 %v1335_v55 }
  0x32   :  { %620 = vmatpush.bf16.msrb.mxu0 %v1310_v56 }
  0x33   :  { %633 = vmatpush.bf16.msrb.mxu1 %v1318_v57  ;;  %v1348_v57 = vld [vmem:[%s1725_s5 + $0x8] sm:$0xff] }
  0x34   :  { %646 = vmatpush.bf16.msrb.mxu2 %v1326_v58  ;;  %v1347_v58 = vld [vmem:[%s1725_s5] sm:$0xff] }
  0x35   :  { %659 = vmatpush.bf16.msrb.mxu3 %v1334_v59  ;;  %v1362_v59 = vld [vmem:[%s1727_s7 + $0x38] sm:$0xff] }
  0x36   :  { %621 = vmatpush.bf16.msrb.mxu0 %v1309_v60  ;;  %v1361_v60 = vld [vmem:[%s1727_s7 + $0x30] sm:$0xff] }
  0x37   :  { %634 = vmatpush.bf16.msrb.mxu1 %v1317_v61  ;;  %v1360_v61 = vld [vmem:[%s1727_s7 + $0x28] sm:$0xff] }
  0x38   :  { %647 = vmatpush.bf16.msrb.mxu2 %v1325_v62  ;;  %v1359_v62 = vld [vmem:[%s1727_s7 + $0x20] sm:$0xff] }
  0x39   :  { %660 = vmatpush.bf16.msrb.mxu3 %v1333_v63  ;;  %v1358_v63 = vld [vmem:[%s1727_s7 + $0x18] sm:$0xff] }
  0x3a   :  { %622 = vmatpush.bf16.msrb.mxu0 %v1308_v0  ;;  %v1357_v0 = vld [vmem:[%s1727_s7 + $0x10] sm:$0xff] }
  0x3b   :  { %635 = vmatpush.bf16.msrb.mxu1 %v1316_v1  ;;  %v1364_v1 = vld [vmem:[%s1723_s4] ss:$0 sm:$0xff] }
  0x3c   :  { %648 = vmatpush.bf16.msrb.mxu2 %v1324_v2 }
  0x3d   :  { %661 = vmatpush.bf16.msrb.mxu3 %v1332_v3 }
  0x3e   :  { %623 = vmatpush.bf16.msrb.mxu0 %v1307_v4 }
  0x3f   :  { %636 = vmatpush.bf16.msrb.mxu1 %v1315_v5 }
  0x40   :  { %649 = vmatpush.bf16.msrb.mxu2 %v1323_v6 }
  0x41   :  { %662 = vmatpush.bf16.msrb.mxu3 %v1331_v9  ;;  %624 = vmatmul.bf16.vlgmr.msrb.gmra.mxu0 %v44_v12  ;;  %v1365_v9 = vld [vmem:[%s1726_s6] ss:$0 sm:$0xff] }
  0x42   :  { %637 = vmatmul.bf16.vlgmr.msrb.gmra.mxu1 %v45_v13  ;;  %738 = vmatpush.bf16.msra.mxu0 %v1346_v16 }
  0x43   :  { %650 = vmatmul.bf16.vlgmr.msrb.gmra.mxu2 %v46_v14  ;;  %821 = vmatpush.bf16.msra.mxu1 %v1354_v31 }
  0x44   :  { %663 = vmatmul.bf16.vlgmr.msrb.gmra.mxu3 %v47_v15  ;;  %904 = vmatpush.bf16.msra.mxu2 %v1362_v59  ;;  %v1366_v15 = vld [vmem:[%s1728_s8] ss:$0 sm:$0xff] }
  0x46   :  { %739 = vmatpush.bf16.msra.mxu0 %v1345_v17 }
  0x47   :  { %822 = vmatpush.bf16.msra.mxu1 %v1353_v34 }
  0x48   :  { %905 = vmatpush.bf16.msra.mxu2 %v1361_v60 }
  0x4a   :  { %740 = vmatpush.bf16.msra.mxu0 %v1344_v18 }
  0x4b   :  { %823 = vmatpush.bf16.msra.mxu1 %v1352_v36 }
  0x4c   :  { %906 = vmatpush.bf16.msra.mxu2 %v1360_v61 }
  0x4e   :  { %741 = vmatpush.bf16.msra.mxu0 %v1343_v19 }
  0x4f   :  { %824 = vmatpush.bf16.msra.mxu1 %v1351_v38 }
  0x50   :  { %907 = vmatpush.bf16.msra.mxu2 %v1359_v62 }
  0x52   :  { %742 = vmatpush.bf16.msra.mxu0 %v1342_v20 }
  0x53   :  { %825 = vmatpush.bf16.msra.mxu1 %v1350_v40 }
  0x54   :  { %908 = vmatpush.bf16.msra.mxu2 %v1358_v63 }
  0x56   :  { %743 = vmatpush.bf16.msra.mxu0 %v1341_v22 }
  0x57   :  { %826 = vmatpush.bf16.msra.mxu1 %v1349_v45 }
  0x58   :  { %909 = vmatpush.bf16.msra.mxu2 %v1357_v0 }
  0x5a   :  { %744 = vmatpush.bf16.msra.mxu0 %v1340_v24 }
  0x5b   :  { %827 = vmatpush.bf16.msra.mxu1 %v1348_v57 }
  0x5c   :  { %910 = vmatpush.bf16.msra.mxu2 %v1356_v7 }
  0x5e   :  { %745 = vmatpush.bf16.msra.mxu0 %v1339_v28 }
  0x5f   :  { %828 = vmatpush.bf16.msra.mxu1 %v1347_v58 }
  0x60   :  { %911 = vmatpush.bf16.msra.mxu2 %v1355_v8 }
  0x9e   :  { %v573_v21 = vpop.f32.mrf.mxu0 }
  0x9f   :  { %v586_v23 = vpop.f32.mrf.mxu1  ;;  %v574_v35 = vadd.f32 %v1363_v30, %v573_v21 }
  0xa1   :  { %v587_v37 = vadd.f32 %v586_v23, %v574_v35 }
  0xa6   :  { %v599_v25 = vpop.f32.mrf.mxu2  ;;  %v575_v27 = vpop.f32.mrf.mxu0 }
  0xa7   :  { %v612_v26 = vpop.f32.mrf.mxu3  ;;  %v588_v29 = vpop.f32.mrf.mxu1  ;;  %v600_v39 = vadd.f32 %v599_v25, %v587_v37 }
  0xa9   :  { %v613_v41 = vadd.f32 %v612_v26, %v600_v39 }
  0xae   :  { %v601_v32 = vpop.f32.mrf.mxu2 }
  0xaf   :  { %v614_v33 = vpop.f32.mrf.mxu3 }
  0xbe   :  { %v625_v42 = vpop.f32.mrf.mxu0 }
  0xbf   :  { %v638_v43 = vpop.f32.mrf.mxu1  ;;  %v626_v44 = vadd.f32 %v625_v42, %v613_v41 }
  0xc1   :  { %v639_v46 = vadd.f32 %v638_v43, %v626_v44 }
  0xc6   :  { %v651_v47 = vpop.f32.mrf.mxu2  ;;  %v627_v50 = vpop.f32.mrf.mxu0 }
  0xc7   :  { %v664_v48 = vpop.f32.mrf.mxu3  ;;  %v652_v49 = vadd.f32 %v651_v47, %v639_v46  ;;  %v640_v51 = vpop.f32.mrf.mxu1 }
  0xc9   :  { %v665_v52 = vadd.f32 %v664_v48, %v652_v49 }
  0xcb   :  { %v668_v53 = vmax.f32 %v665_v52, 0.0 }
  0xcd   :  { %v669_v54 = vpack.c.bf16 %v668_v53, %v668_v53 }
  0xce   :  { %v653_v55 = vpop.f32.mrf.mxu2 }
  0xcf   :  { %v666_v56 = vpop.f32.mrf.mxu3  ;;  %746 = vmatmul.bf16.vlgmr.msra.gmra.mxu0 %v669_v54 }
 0x14c   :  { %v747_v2 = vpop.f32.mrf.mxu0 }
 0x14d   :  { %v748_v3 = vadd.f32 %v1364_v1, %v747_v2 }
 0x14f   :  { %v751_v4 = vmax.f32 %v748_v3, 0.0 }
 0x151   :  { %v752_v5 = vpack.c.bf16 %v751_v4, %v751_v4 }
 0x153   :  { %829 = vmatmul.bf16.vlgmr.msra.gmra.mxu1 %v752_v5 }
 0x154   :  { %v749_v6 = vpop.f32.mrf.mxu0 }
 0x1d0   :  { %v830_v10 = vpop.f32.mrf.mxu1 }
 0x1d1   :  { %v831_v11 = vadd.f32 %v1365_v9, %v830_v10 }
 0x1d3   :  { %v834_v12 = vmax.f32 %v831_v11, 0.0 }
 0x1d5   :  { %v835_v13 = vpack.c.bf16 %v834_v12, %v834_v12 }
 0x1d7   :  { %912 = vmatmul.bf16.vlgmr.msra.gmra.mxu2 %v835_v13 }
 0x1d8   :  { %v832_v14 = vpop.f32.mrf.mxu1 }
 0x25a   :  { %v913_v16 = vpop.f32.mrf.mxu2 }
 0x25b   :  { %v914_v17 = vadd.f32 %v1366_v15, %v913_v16 }
 0x25d   :  { %v917_v18 = vpack.c.bf16 %v914_v17, %v914_v17 }
 0x25f   :  { %918 = vst [vmem:[%s1729_s9] sm:$0xf] %v917_v18 }
 0x262   :  { %v915_v19 = vpop.f32.mrf.mxu2 }

</bundles_post_ra>
